<compile_context>
chip_gen: v7x
topology: tpu7x:2x2x1
jax: 0.10.0
libtpu: 0.0.40
codegen_flags: <defaults>
</compile_context>

<pallas_src>
import math

import jax
import jax.numpy as jnp
from jax import lax
from jax.experimental import pallas as pl
from jax.experimental.pallas import tpu as pltpu

# ---- module hyperparameters (mirror GraphSelfAttentionLayer.__init__) ----
FEAT_DIM = 32          # feat_dim
NUM_HEADS = 8          # num_heads == fc_dim
NONGT_DIM = 20         # nongt_dim (clamped to num_rois in forward)
M_MEM = 10             # m (memory slots)
POS_EMB_DIM = -1       # explicit relation -> geometric branch disabled
DIM_GROUP = FEAT_DIM // NUM_HEADS
NEG_INF = -9e15


def _gsa_kernel(roi_ref, aux_ref, bias_ref, sel_ref, wqk_ref, wo_ref, pslab_ref, out_ref):
    """One batch element per grid step: fused all-head attention + grouped projection."""
    N, F = roi_ref.shape           # [num_rois, feat_dim]
    HN, K = bias_ref.shape         # [num_heads * N, nongt_k + m]
    H = HN // N
    m = (pslab_ref.shape[0] - 3) // 2
    nongt = K - m                  # 8-aligned key-row count (<= N), set by the wrapper

    x = roi_ref[...]               # [N, F]
    aux = aux_ref[...]             # [1, F]
    sel = sel_ref[...]             # [HN, F] block-diagonal head-selection mask (0/1)

    # ---- fused query / key projection (one MXU pass; 1/sqrt(dg) folded into Wq, bq) ----
    qk = jnp.dot(x, wqk_ref[...], preferred_element_type=jnp.float32)      # [N, 2F]
    q = qk[:, :F] + pslab_ref[2 * m:2 * m + 1, :]                          # [N, F]
    k_roi = qk[:nongt, F:] + pslab_ref[2 * m + 1:2 * m + 2, :]             # [nongt, F]

    # memory keys/values: sqrt(F/H) pre-folded into the slab; runtime `* aux` stays here.
    mk = pslab_ref[0:m, :] * aux                                           # [m, F]
    mv = pslab_ref[m:2 * m, :] * aux                                       # [m, F]

    # fused key / value tables: roi slots followed by memory slots (sublane concat)
    k_all = jnp.concatenate([k_roi, mk], axis=0)                           # [K, F]
    v_all = jnp.concatenate([x[:nongt, :], mv], axis=0)                    # [K, F]

    # ---- all-head scores in ONE MXU matmul via the precomputed block-diagonal mask ----
    q_bd = jnp.tile(q, (H, 1)) * sel                                       # [HN, F]
    scores = lax.dot_general(                                              # [HN, K]
        q_bd, k_all,
        dimension_numbers=(((1,), (1,)), ((), ())),
        preferred_element_type=jnp.float32)

    # adjacency mask + label bias, already padded/tiled in the wrapper: one VPU add.
    scores = scores + bias_ref[...]

    # ---- single packed softmax over the joint (roi + memory) key axis ----
    mx = jnp.max(scores, axis=-1, keepdims=True)
    e = jnp.exp(scores - mx)
    inv = pl.reciprocal(jnp.sum(e, axis=-1, keepdims=True), approx=False)  # [HN, 1]

    # PV matmul first, normalize after (shorter dependency chain into the MXU).
    ctx = jnp.dot(e, v_all, preferred_element_type=jnp.float32) * inv      # [HN, F]

    # ---- grouped 1x1 conv: one dense matmul + per-head column select, single store ----
    out_big = jnp.dot(ctx, wo_ref[...], preferred_element_type=jnp.float32) * sel
    out = out_big[0:N, :]
    for h in range(1, H):                         # H-1 aligned [N, F] VPU adds
        out = out + out_big[h * N:(h + 1) * N, :]
    out_ref[...] = out + pslab_ref[2 * m + 2:2 * m + 3, :]   # lane-dense [N, F] store


def graph_self_attention(roi_feat, adj_matrix, label_biases_att, aux_feat, kparams):
    B, N, F = roi_feat.shape
    H = NUM_HEADS
    dg = F // H
    m = M_MEM
    assert m > 0, "memory slots keep every softmax row finite when adjacency is all-zero"

    nongt = min(NONGT_DIM, N)
    # 8-aligned key-row count (capped at N): keeps sublane slices/concats tile-aligned.
    nongt_k = min(((nongt + 7) // 8) * 8, N)
    K = nongt_k + m

    # ---- fused additive attention bias, padded to K columns and pre-tiled over heads ----
    roi_bias = jnp.where(adj_matrix > 0, 0.0, jnp.float32(NEG_INF)) + label_biases_att
    if nongt_k > nongt:   # padded key columns are fully masked
        pad = jnp.full((B, N, nongt_k - nongt), NEG_INF, jnp.float32)
        roi_bias = jnp.concatenate([roi_bias, pad], axis=-1)
    bias = jnp.concatenate([roi_bias, jnp.zeros((B, N, m), jnp.float32)], axis=-1)
    bias_big = jnp.tile(bias, (1, H, 1))                                   # [B, H*N, K]

    # ---- grid-invariant block-diagonal head-selection mask ----
    row_head = jnp.arange(H * N, dtype=jnp.int32)[:, None] // N
    col_head = jnp.arange(F, dtype=jnp.int32)[None, :] // dg
    sel = (row_head == col_head).astype(jnp.float32)                       # [H*N, F]

    bcast2 = lambda b: (0, 0)

    return pl.pallas_call(
        _gsa_kernel,
        out_shape=jax.ShapeDtypeStruct((B, N, F), jnp.float32),
        grid=(B,),
        in_specs=[
            pl.BlockSpec((None, N, F), lambda b: (b, 0, 0)),          # roi_feat
            pl.BlockSpec((None, 1, F), lambda b: (b, 0, 0)),          # aux_feat
            pl.BlockSpec((None, H * N, K), lambda b: (b, 0, 0)),      # fused additive bias
            pl.BlockSpec((H * N, F), bcast2),                         # head-selection mask
            pl.BlockSpec((F, 2 * F), bcast2),                         # [Wq^T*scale | Wk^T]
            pl.BlockSpec((F, F), bcast2),                             # Wout^T (grouped conv)
            pl.BlockSpec((2 * m + 3, F), bcast2),                     # m_k|m_v|bq|bk|bo slab
        ],
        out_specs=pl.BlockSpec((None, N, F), lambda b: (b, 0, 0)),
        compiler_params=pltpu.CompilerParams(dimension_semantics=("parallel",)),
    )(roi_feat, aux_feat, bias_big, sel,
      kparams["wqk_t"], kparams["wo_t"], kparams["pslab"])


def prepare_kernel_params(params):
    """Compile-time param prep: fold static scales, fuse q/k weights, build slabs."""
    att_scale = 1.0 / math.sqrt(DIM_GROUP)            # folded into Wq, bq
    mem_scale = math.sqrt(FEAT_DIM / NUM_HEADS)       # folded into m_k, m_v
    wqk_t = jnp.concatenate([att_scale * params["wq_t"], params["wk_t"]], axis=1)  # [F,2F]
    pslab = jnp.concatenate([
        mem_scale * params["m_k"],        # rows [0, m)
        mem_scale * params["m_v"],        # rows [m, 2m)
        att_scale * params["bq"],         # row 2m
        params["bk"],                     # row 2m+1
        params["bo"],                     # row 2m+2
    ], axis=0)                            # [2m+3, F]
    return {"wqk_t": wqk_t, "wo_t": params["wo_t"], "pslab": pslab}


def reference_forward(roi_feat, adj, lbias, aux, params):
    """Pure-JAX transcription of the PyTorch forward (eval mode) for verification."""
    B, N, F = roi_feat.shape
    H, dg, m = NUM_HEADS, DIM_GROUP, M_MEM
    nongt = min(NONGT_DIM, N)
    x_ng = roi_feat[:, :nongt, :]
    q = roi_feat @ params["wq_t"] + params["bq"]
    k_roi = x_ng @ params["wk_t"] + params["bk"]
    mem_scale = math.sqrt(F / H)
    m_k = mem_scale * params["m_k"][None]
    m_v = mem_scale * params["m_v"][None]
    k_data = jnp.concatenate([k_roi, m_k * aux], axis=1)       # [B, nongt+m, F]
    v_data = jnp.concatenate([x_ng, m_v * aux], axis=1)        # [B, nongt+m, F]
    qb = q.reshape(B, N, H, dg).transpose(0, 2, 1, 3)
    kb = k_data.reshape(B, nongt + m, H, dg).transpose(0, 2, 1, 3)
    aff = jnp.einsum("bhnd,bhkd->bhnk", qb, kb) / math.sqrt(dg)
    wa = aff.transpose(0, 2, 1, 3)                              # [B, N, H, K]
    wat = wa.transpose(0, 1, 3, 2)                              # [B, N, K, H]
    masked = (jnp.where(adj[..., None] > 0, wat[:, :, :nongt, :], NEG_INF)
              + lbias[..., None])
    wat = wat.at[:, :, :nongt, :].set(masked)
    wa = wat.transpose(0, 1, 3, 2)
    p = jax.nn.softmax(wa, axis=3)
    p2 = p.reshape(B, N * H, nongt + m)
    out_t = jnp.matmul(p2, v_data).reshape(B * N, H, F)
    wo3 = params["wo_t"].T.reshape(H, dg, F)                    # [H, dg, F]
    out_c = (jnp.einsum("xhf,hdf->xhd", out_t, wo3).reshape(B * N, F)
             + params["bo"].reshape(F))
    return out_c.reshape(B, N, F)


def make_params(key):
    F, H, m = FEAT_DIM, NUM_HEADS, M_MEM
    ks = jax.random.split(key, 8)
    return {
        # FCNet query/key: effective affine weights (weight_norm absorbed), stored transposed.
        "wq_t": jax.random.normal(ks[0], (F, F), jnp.float32) / math.sqrt(F),
        "bq": 0.01 * jax.random.normal(ks[1], (1, F), jnp.float32),
        "wk_t": jax.random.normal(ks[2], (F, F), jnp.float32) / math.sqrt(F),
        "bk": 0.01 * jax.random.normal(ks[3], (1, F), jnp.float32),
        # memory matrices, PyTorch init: N(0, 1/F/H) and N(0, 1/m)
        "m_k": jax.random.normal(ks[4], (m, F), jnp.float32) * (1.0 / F / H),
        "m_v": jax.random.normal(ks[5], (m, F), jnp.float32) * (1.0 / m),
        # grouped 1x1 conv effective weight [F_out, F_in/group]=[F, F], stored transposed.
        "wo_t": jax.random.normal(ks[6], (F, F), jnp.float32) / math.sqrt(F),
        "bo": 0.01 * jax.random.normal(ks[7], (1, F), jnp.float32),
    }


if __name__ == "__main__":
    B, N, F = 2, 16, FEAT_DIM
    nongt = min(NONGT_DIM, N)

    key = jax.random.PRNGKey(0)
    kroi, kadj, kbias, kaux, kparam = jax.random.split(key, 5)

    roi_feat = jax.random.normal(kroi, (B, N, F), jnp.float32)
    adj_matrix = (jax.random.uniform(kadj, (B, N, nongt)) > 0.5).astype(jnp.float32)
    label_biases_att = 0.1 * jax.random.normal(kbias, (B, N, nongt), jnp.float32)
    aux_feat = jax.random.normal(kaux, (B, 1, F), jnp.float32)
    params = make_params(kparam)
    kernel_params = prepare_kernel_params(params)

    # TODO(synk): geometric branch (pos_emb_dim > 0 with pair_pos_fc1) not exercised;
    # this config uses pos_emb_dim = -1 (explicit relation), matching the module default path.
    run = jax.jit(lambda r, a, lb, ax: graph_self_attention(r, a, lb, ax, kernel_params))
    out = jax.block_until_ready(run(roi_feat, adj_matrix, label_biases_att, aux_feat))

    ref = reference_forward(roi_feat, adj_matrix, label_biases_att, aux_feat, params)
    err = float(jnp.max(jnp.abs(out - ref)))
    assert out.shape == (B, N, F), out.shape
    # Tolerance covers default (bf16-truncated) MXU precision; any logic/mask/head-mapping
    # bug would show up as an O(1) error.
    assert err < 3e-2, f"kernel/reference mismatch, max abs err = {err}"
    print("KERNEL_OK")
</pallas_src>

<mosaic_0001>
module attributes {stable_mosaic.version = 11 : i64} {
  func.func @_gsa_kernel(%arg0: i32, %arg1: memref<1x16x32xf32, #tpu.memory_space<vmem>>, %arg2: memref<1x1x32xf32, #tpu.memory_space<vmem>>, %arg3: memref<1x128x26xf32, #tpu.memory_space<vmem>>, %arg4: memref<128x32xf32, #tpu.memory_space<vmem>>, %arg5: memref<32x64xf32, #tpu.memory_space<vmem>>, %arg6: memref<32x32xf32, #tpu.memory_space<vmem>>, %arg7: memref<23x32xf32, #tpu.memory_space<vmem>>, %arg8: memref<1x16x32xf32, #tpu.memory_space<vmem>>) attributes {dimension_semantics = [#tpu.dimension_semantics<parallel>], iteration_bounds = array<i64: 2>, scalar_prefetch = 0 : i64, scratch_operands = 0 : i64, tpu.core_type = #tpu.core_type<tc>, window_params = [{transform_indices = @transform_0, window_bounds = array<i64: 1, 16, 32>}, {transform_indices = @transform_1, window_bounds = array<i64: 1, 1, 32>}, {transform_indices = @transform_2, window_bounds = array<i64: 1, 128, 26>}, {pipeline_mode = #tpu.pipeline_mode<synchronous>, transform_indices = @transform_3, window_bounds = array<i64: 128, 32>}, {pipeline_mode = #tpu.pipeline_mode<synchronous>, transform_indices = @transform_4, window_bounds = array<i64: 32, 64>}, {pipeline_mode = #tpu.pipeline_mode<synchronous>, transform_indices = @transform_5, window_bounds = array<i64: 32, 32>}, {pipeline_mode = #tpu.pipeline_mode<synchronous>, transform_indices = @transform_6, window_bounds = array<i64: 23, 32>}, {transform_indices = @transform_7, window_bounds = array<i64: 1, 16, 32>}]} {
    %c0 = arith.constant 0 : index
    %c0_0 = arith.constant 0 : index
    %c0_1 = arith.constant 0 : index
    %0 = vector.load %arg1[%c0, %c0_0, %c0_1] : memref<1x16x32xf32, #tpu.memory_space<vmem>>, vector<1x16x32xf32>
    %1 = vector.shape_cast %0 : vector<1x16x32xf32> to vector<16x32xf32>
    %c0_2 = arith.constant 0 : index
    %c0_3 = arith.constant 0 : index
    %c0_4 = arith.constant 0 : index
    %2 = vector.load %arg2[%c0_2, %c0_3, %c0_4] : memref<1x1x32xf32, #tpu.memory_space<vmem>>, vector<1x1x32xf32>
    %3 = vector.shape_cast %2 : vector<1x1x32xf32> to vector<1x32xf32>
    %c0_5 = arith.constant 0 : index
    %c0_6 = arith.constant 0 : index
    %4 = vector.load %arg4[%c0_5, %c0_6] : memref<128x32xf32, #tpu.memory_space<vmem>>, vector<128x32xf32>
    %c0_7 = arith.constant 0 : index
    %c0_8 = arith.constant 0 : index
    %5 = vector.load %arg5[%c0_7, %c0_8] : memref<32x64xf32, #tpu.memory_space<vmem>>, vector<32x64xf32>
    %cst = arith.constant dense<0.000000e+00> : vector<16x64xf32>
    %6 = tpu.matmul %1, %5, %cst {dimension_numbers = #tpu.dot_dimension_numbers<[1], [0], [0], [1], [0, 0, 1, 1], [], []>} : vector<16x32xf32>, vector<32x64xf32>, vector<16x64xf32> -> vector<16x64xf32>
    %7 = vector.extract_strided_slice %6 {offsets = [0, 0], sizes = [16, 32], strides = [1, 1]} : vector<16x64xf32> to vector<16x32xf32>
    %c20 = arith.constant 20 : index
    %c0_9 = arith.constant 0 : index
    %8 = vector.load %arg7[%c20, %c0_9] : memref<23x32xf32, #tpu.memory_space<vmem>>, vector<1x32xf32>
    %9 = vector.broadcast %8 : vector<1x32xf32> to vector<16x32xf32>
    %10 = arith.addf %7, %9 : vector<16x32xf32>
    %11 = vector.extract_strided_slice %6 {offsets = [0, 32], sizes = [16, 32], strides = [1, 1]} : vector<16x64xf32> to vector<16x32xf32>
    %c21 = arith.constant 21 : index
    %c0_10 = arith.constant 0 : index
    %12 = vector.load %arg7[%c21, %c0_10] : memref<23x32xf32, #tpu.memory_space<vmem>>, vector<1x32xf32>
    %13 = vector.broadcast %12 : vector<1x32xf32> to vector<16x32xf32>
    %14 = arith.addf %11, %13 : vector<16x32xf32>
    %c0_11 = arith.constant 0 : index
    %c0_12 = arith.constant 0 : index
    %15 = vector.load %arg7[%c0_11, %c0_12] : memref<23x32xf32, #tpu.memory_space<vmem>>, vector<10x32xf32>
    %16 = vector.broadcast %3 : vector<1x32xf32> to vector<10x32xf32>
    %17 = arith.mulf %15, %16 : vector<10x32xf32>
    %c10 = arith.constant 10 : index
    %c0_13 = arith.constant 0 : index
    %18 = vector.load %arg7[%c10, %c0_13] : memref<23x32xf32, #tpu.memory_space<vmem>>, vector<10x32xf32>
    %19 = vector.broadcast %3 : vector<1x32xf32> to vector<10x32xf32>
    %20 = arith.mulf %18, %19 : vector<10x32xf32>
    %21 = tpu.concatenate %14, %17 in 0 : vector<16x32xf32>, vector<10x32xf32> -> vector<26x32xf32>
    %22 = tpu.concatenate %1, %20 in 0 : vector<16x32xf32>, vector<10x32xf32> -> vector<26x32xf32>
    %23 = tpu.concatenate %10, %10, %10, %10, %10, %10, %10, %10 in 0 : vector<16x32xf32>, vector<16x32xf32>, vector<16x32xf32>, vector<16x32xf32>, vector<16x32xf32>, vector<16x32xf32>, vector<16x32xf32>, vector<16x32xf32> -> vector<128x32xf32>
    %24 = arith.mulf %23, %4 : vector<128x32xf32>
    %cst_14 = arith.constant dense<0.000000e+00> : vector<128x26xf32>
    %25 = tpu.matmul %24, %21, %cst_14 {dimension_numbers = #tpu.dot_dimension_numbers<[1], [1], [0], [0], [0, 0, 1, 0], [], []>} : vector<128x32xf32>, vector<26x32xf32>, vector<128x26xf32> -> vector<128x26xf32>
    %c0_15 = arith.constant 0 : index
    %c0_16 = arith.constant 0 : index
    %c0_17 = arith.constant 0 : index
    %26 = vector.load %arg3[%c0_15, %c0_16, %c0_17] : memref<1x128x26xf32, #tpu.memory_space<vmem>>, vector<1x128x26xf32>
    %27 = vector.shape_cast %26 : vector<1x128x26xf32> to vector<128x26xf32>
    %28 = arith.addf %25, %27 : vector<128x26xf32>
    %cst_18 = arith.constant dense<0xFF800000> : vector<128xf32>
    %29 = vector.multi_reduction <maximumf>, %28, %cst_18 [1] : vector<128x26xf32> to vector<128xf32>
    %30 = vector.shape_cast %29 : vector<128xf32> to vector<128x1xf32>
    %31 = vector.broadcast %30 : vector<128x1xf32> to vector<128x26xf32>
    %32 = arith.subf %28, %31 : vector<128x26xf32>
    %33 = math.exp %32 : vector<128x26xf32>
    %cst_19 = arith.constant dense<0.000000e+00> : vector<128xf32>
    %34 = vector.multi_reduction <add>, %33, %cst_19 [1] : vector<128x26xf32> to vector<128xf32>
    %35 = vector.shape_cast %34 : vector<128xf32> to vector<128x1xf32>
    %36 = tpu.reciprocal %35 : vector<128x1xf32> -> vector<128x1xf32>
    %cst_20 = arith.constant dense<0.000000e+00> : vector<128x32xf32>
    %37 = tpu.matmul %33, %22, %cst_20 {dimension_numbers = #tpu.dot_dimension_numbers<[1], [0], [0], [1], [0, 0, 1, 1], [], []>} : vector<128x26xf32>, vector<26x32xf32>, vector<128x32xf32> -> vector<128x32xf32>
    %38 = vector.broadcast %36 : vector<128x1xf32> to vector<128x32xf32>
    %39 = arith.mulf %37, %38 : vector<128x32xf32>
    %c0_21 = arith.constant 0 : index
    %c0_22 = arith.constant 0 : index
    %40 = vector.load %arg6[%c0_21, %c0_22] : memref<32x32xf32, #tpu.memory_space<vmem>>, vector<32x32xf32>
    %cst_23 = arith.constant dense<0.000000e+00> : vector<128x32xf32>
    %41 = tpu.matmul %39, %40, %cst_23 {dimension_numbers = #tpu.dot_dimension_numbers<[1], [0], [0], [1], [0, 0, 1, 1], [], []>} : vector<128x32xf32>, vector<32x32xf32>, vector<128x32xf32> -> vector<128x32xf32>
    %42 = arith.mulf %41, %4 : vector<128x32xf32>
    %43 = vector.extract_strided_slice %42 {offsets = [0, 0], sizes = [16, 32], strides = [1, 1]} : vector<128x32xf32> to vector<16x32xf32>
    %44 = vector.extract_strided_slice %42 {offsets = [16, 0], sizes = [16, 32], strides = [1, 1]} : vector<128x32xf32> to vector<16x32xf32>
    %45 = arith.addf %43, %44 : vector<16x32xf32>
    %46 = vector.extract_strided_slice %42 {offsets = [32, 0], sizes = [16, 32], strides = [1, 1]} : vector<128x32xf32> to vector<16x32xf32>
    %47 = arith.addf %45, %46 : vector<16x32xf32>
    %48 = vector.extract_strided_slice %42 {offsets = [48, 0], sizes = [16, 32], strides = [1, 1]} : vector<128x32xf32> to vector<16x32xf32>
    %49 = arith.addf %47, %48 : vector<16x32xf32>
    %50 = vector.extract_strided_slice %42 {offsets = [64, 0], sizes = [16, 32], strides = [1, 1]} : vector<128x32xf32> to vector<16x32xf32>
    %51 = arith.addf %49, %50 : vector<16x32xf32>
    %52 = vector.extract_strided_slice %42 {offsets = [80, 0], sizes = [16, 32], strides = [1, 1]} : vector<128x32xf32> to vector<16x32xf32>
    %53 = arith.addf %51, %52 : vector<16x32xf32>
    %54 = vector.extract_strided_slice %42 {offsets = [96, 0], sizes = [16, 32], strides = [1, 1]} : vector<128x32xf32> to vector<16x32xf32>
    %55 = arith.addf %53, %54 : vector<16x32xf32>
    %56 = vector.extract_strided_slice %42 {offsets = [112, 0], sizes = [16, 32], strides = [1, 1]} : vector<128x32xf32> to vector<16x32xf32>
    %57 = arith.addf %55, %56 : vector<16x32xf32>
    %c22 = arith.constant 22 : index
    %c0_24 = arith.constant 0 : index
    %58 = vector.load %arg7[%c22, %c0_24] : memref<23x32xf32, #tpu.memory_space<vmem>>, vector<1x32xf32>
    %59 = vector.broadcast %58 : vector<1x32xf32> to vector<16x32xf32>
    %60 = arith.addf %57, %59 : vector<16x32xf32>
    %c0_25 = arith.constant 0 : index
    %c0_26 = arith.constant 0 : index
    %c0_27 = arith.constant 0 : index
    %61 = vector.load %arg8[%c0_25, %c0_26, %c0_27] : memref<1x16x32xf32, #tpu.memory_space<vmem>>, vector<1x16x32xf32>
    %62 = vector.shape_cast %61 : vector<1x16x32xf32> to vector<16x32xf32>
    %63 = vector.shape_cast %60 : vector<16x32xf32> to vector<1x16x32xf32>
    tpu.vector_store %arg8[%c0_25, %c0_26, %c0_27], %63 {strides = array<i32>} : memref<1x16x32xf32, #tpu.memory_space<vmem>>, vector<1x16x32xf32>,
    return
  }
  func.func @transform_0(%arg0: i32) -> (i32, i32, i32) {
    %c0_i32 = arith.constant 0 : i32
    %c0_i32_0 = arith.constant 0 : i32
    %c0_i32_1 = arith.constant 0 : i32
    return %arg0, %c0_i32, %c0_i32_0 : i32, i32, i32
  }
  func.func @transform_1(%arg0: i32) -> (i32, i32, i32) {
    %c0_i32 = arith.constant 0 : i32
    %c0_i32_0 = arith.constant 0 : i32
    %c0_i32_1 = arith.constant 0 : i32
    return %arg0, %c0_i32, %c0_i32_0 : i32, i32, i32
  }
  func.func @transform_2(%arg0: i32) -> (i32, i32, i32) {
    %c0_i32 = arith.constant 0 : i32
    %c0_i32_0 = arith.constant 0 : i32
    %c0_i32_1 = arith.constant 0 : i32
    return %arg0, %c0_i32, %c0_i32_0 : i32, i32, i32
  }
  func.func @transform_3(%arg0: i32) -> (i32, i32) {
    %c0_i32 = arith.constant 0 : i32
    %c0_i32_0 = arith.constant 0 : i32
    %c0_i32_1 = arith.constant 0 : i32
    return %c0_i32, %c0_i32_0 : i32, i32
  }
  func.func @transform_4(%arg0: i32) -> (i32, i32) {
    %c0_i32 = arith.constant 0 : i32
    %c0_i32_0 = arith.constant 0 : i32
    %c0_i32_1 = arith.constant 0 : i32
    return %c0_i32, %c0_i32_0 : i32, i32
  }
  func.func @transform_5(%arg0: i32) -> (i32, i32) {
    %c0_i32 = arith.constant 0 : i32
    %c0_i32_0 = arith.constant 0 : i32
    %c0_i32_1 = arith.constant 0 : i32
    return %c0_i32, %c0_i32_0 : i32, i32
  }
  func.func @transform_6(%arg0: i32) -> (i32, i32) {
    %c0_i32 = arith.constant 0 : i32
    %c0_i32_0 = arith.constant 0 : i32
    %c0_i32_1 = arith.constant 0 : i32
    return %c0_i32, %c0_i32_0 : i32, i32
  }
  func.func @transform_7(%arg0: i32) -> (i32, i32, i32) {
    %c0_i32 = arith.constant 0 : i32
    %c0_i32_0 = arith.constant 0 : i32
    %c0_i32_1 = arith.constant 0 : i32
    return %arg0, %c0_i32, %c0_i32_0 : i32, i32, i32
  }
}

</mosaic_0001>

<bundles_post_ra>
// kernel: _lambda_.1
= control target key start
LH: loop header
LB: loop body
LE: loop exit
PB: predicated region body
PF: predicated region fallthrough
CT: control target
= control target key end

     0   :  { %12 = vsyncpa [#allocation3], 0  ;;  %s2383_s0 = inlined_call_operand.vmem [shape: f32[2,16,32], index: 0, kind: input, shape index: {}]   ;;  %s2384_s1 = inlined_call_operand.vmem [shape: f32[2,1,32], index: 1, kind: input, shape index: {}]   ;;  %s2385_s2 = inlined_call_operand.vmem [shape: f32[2,128,26], index: 2, kind: input, shape index: {}]   ;;  %s2386_s3 = inlined_call_operand.vmem [shape: f32[128,32], index: 3, kind: input, shape index: {}]   ;;  %s2387_s4 = inlined_call_operand.vmem [shape: f32[32,64], index: 4, kind: input, shape index: {}]   ;;  %s2388_s5 = inlined_call_operand.vmem [shape: f32[32,32], index: 5, kind: input, shape index: {}]   ;;  %s2389_s6 = inlined_call_operand.vmem [shape: f32[23,32], index: 6, kind: input, shape index: {}]   ;;  %s2390_s7 = inlined_call_operand.hbm [shape: f32[2,16,32], index: 7, kind: output, shape index: {}]  }
   0x1   :  { %14 = vsyncpa [#allocation3 + $0x1], 0  ;;  %s1928_s24 = smov 0   ;;  %s1930_s25 = smov 0  }
   0x2   :  { %s1932_s26 = smov 0   ;;  %s1934_s27 = smov 0  }
   0x3 LB: > { %s1949_s28 = sadd.s32 4294967295, %s1880_s27   ;;  %s1404_s29 = sadd.s32 4294967294, %s1880_s27   ;;  %s1880_s27 = sphi %s1934_s27, %s2396_s27   ;;  %s1876_s26 = sphi %s1932_s26, %s2395_s26   ;;  %s1872_s25 = sphi %s1930_s25, %s2394_s25   ;;  %s1868_s24 = sphi %s1928_s24, %s2393_s24  }
   0x4   : > { %s1953_s30 = sadd.s32 1, %s1880_s27   ;;  %s189_s8 = sadd.s32 1, %s1876_s26 }
   0x5   : > { %s186_s9 = ssub.s32 %s1880_s27, %s1953_s30  ;;  %p199_p0 = scmp.ne.s32.totalorder %s1876_s26, %s1872_s25 }
   0x6   : > { %p187_p1 = scmp.eq.s32.totalorder %s186_s9, 0  ;;  %p200_p2 = scmp.eq.s32.totalorder %s1949_s28, 1 }
   0x7   : > { %p205_p3 = scmp.ne.s32.totalorder %s1872_s25, %s1868_s24  ;;  %p206_p4 = scmp.eq.s32.totalorder %s1404_s29, 1 }
   0x8   : > { %s1964_s10 = scalar_select %p187_p1, %s1876_s26, %s189_s8  }
   0x9   : > { %p1966_p5 = por %p200_p2, %p199_p0  ;;  %p1970_p6 = por %p206_p4, %p205_p3 }
   0xa   : > { %p1407_p7 = scmp.ge.s32.totalorder %s1880_s27, 1  ;;  %p258_p8 = scmp.lt.s32.totalorder %s1880_s27, 3 }
   0xc   : > { %p259_p9 = pnand %p1407_p7, %p258_p8 }
   0xd   : > { %v330_v0 = vld [vmem:[%s2387_s4] sm:$0xff] (!%p259_p9)  ;;  %v331_v1 = vld [vmem:[%s2387_s4 + $0x8] sm:$0xff] (!%p259_p9)  ;;  %v332_v2 = vld [vmem:[%s2387_s4 + $0x10] sm:$0xff] (!%p259_p9)  ;;  %p298_p10 = scmp.lt.s32.totalorder (!%p259_p9), %s1949_s28, 1  ;;  %s1882_s29 = smov (!%p259_p9), 32   ;;  %vm334_vm0 = vcmask (!%p259_p9), 261120  }
   0xe   : > { %262 = sbr.rel (%p259_p9) target bundleno = 1235 (0x4d3), region = 48  ;;  %v1653_v3 = vpack.c.bf16 (!%p259_p9), %v331_v1, %v330_v0  ;;  %v333_v4 = vld [vmem:[%s2387_s4 + $0x18] sm:$0xff] (!%p259_p9)  ;;  %v1416_v5 = vld [vmem:[%s2389_s6 + $0x15] ss:$0 sm:$0xff] (!%p259_p9)  ;;  %v434_v7 = vld [vmem:[%s2389_s6] sm:$0xff] (!%p259_p9)  ;;  %vm697_vm2 = vcmask (!%p259_p9), 211968  }
   0xf   : > { %v1657_v6 = vpack.c.bf16 (!%p259_p9), %v333_v4, %v332_v2  ;;  %429 = vrot.lane.b32.xlu0 (!%p259_p9), %v1416_v5, %s1882_s29  ;;  %v435_v8 = vld [vmem:[%s2389_s6 + $0x8] sm:$0x3] (!%p259_p9)  ;;  %v1415_v17 = vld [vmem:[%s2389_s6 + $0x14] ss:$0 sm:$0xff] (!%p259_p9)  ;;  %v2023_v23 = vld [vmem:[%s2386_s3] sm:$0xff] (!%p259_p9)  ;;  %vm906_vm3 = vcmask (!%p259_p9), 1041408  }
  0x10   : > { %1654 = vmatprep.subr.bf16.mxu0 (!%p259_p9), %v1653_v3  ;;  %vm1662_vm1 = vmpackc.low (!%p259_p9), %vm334_vm0, %vm334_vm0  ;;  %v2032_v36 = vld [vmem:[%s2386_s3 + $0x8] sm:$0xff] (!%p259_p9)  ;;  %v2037_v37 = vld [vmem:[%s2386_s3 + $0x10] sm:$0xff] (!%p259_p9)  ;;  %vm1884_vm4 = vmmov (!%p259_p9), 1   ;;  %s295_s20 = sand.u32 (!%p259_p9), 1, %s1872_s25   ;;  %s1885_s17 = smov (!%p259_p9), [#allocation2]  }
  0x11   : > { %1656 = vmatpush3.bf16.msra.mxu0 (!%p259_p9), %v1653_v3  ;;  %v2045_v40 = vld [vmem:[%s2386_s3 + $0x18] sm:$0xff] (!%p259_p9)  ;;  %v2051_v41 = vld [vmem:[%s2386_s3 + $0x20] sm:$0xff] (!%p259_p9)  ;;  %v2060_v44 = vld [vmem:[%s2386_s3 + $0x28] sm:$0xff] (!%p259_p9) }
  0x12   : > { %1658 = vmatprep.subr.bf16.mxu0 (!%p259_p9), %v1657_v6  ;;  %v2066_v45 = vld [vmem:[%s2386_s3 + $0x30] sm:$0xff] (!%p259_p9)  ;;  %v2075_v48 = vld [vmem:[%s2386_s3 + $0x38] sm:$0xff] (!%p259_p9)  ;;  %v2081_v49 = vld [vmem:[%s2386_s3 + $0x40] sm:$0xff] (!%p259_p9) }
  0x13   : > { %v2090_v52 = vld [vmem:[%s2386_s3 + $0x48] sm:$0xff] (!%p259_p9)  ;;  %v2096_v53 = vld [vmem:[%s2386_s3 + $0x50] sm:$0xff] (!%p259_p9)  ;;  %v2105_v56 = vld [vmem:[%s2386_s3 + $0x58] sm:$0xff] (!%p259_p9) }
  0x14   : > { %v2111_v57 = vld [vmem:[%s2386_s3 + $0x60] sm:$0xff] (!%p259_p9)  ;;  %v2120_v60 = vld [vmem:[%s2386_s3 + $0x68] sm:$0xff] (!%p259_p9)  ;;  %v2126_v61 = vld [vmem:[%s2386_s3 + $0x70] sm:$0xff] (!%p259_p9) }
  0x15   : > { %s1993_s23 = scalar_select %p298_p10, %s1949_s28, 1  ;;  %1660 = vmatpush3.bf16.msra.mxu0 %v1657_v6  ;;  %v2135_v0 = vld [vmem:[%s2386_s3 + $0x78] sm:$0xff]  ;;  %vm1678_vm5 = vmpackc.low %vm906_vm3, %vm1884_vm4 }
  0x17   : > { %s1477_s8 = sshll.u32 %s1993_s23, 4  ;;  %s305_s21 = scalar_lea.vmem %s2384_s1, %s1993_s23 }
  0x18   : > { %s302_s14 = scalar_lea.vmem %s2383_s0, %s1477_s8  ;;  %v2010_v12 = vld [vmem:[%s305_s21] ss:$0 sm:$0xff]  ;;  %s1478_s18 = sshll.u32 %s1993_s23, 7 }
  0x19   : > { %v311_v9 = vld [vmem:[%s302_s14] sm:$0xff]  ;;  %v312_v10 = vld [vmem:[%s302_s14 + $0x8] sm:$0xff]  ;;  %v442_v13 = vmul.f32 %v2010_v12, %v434_v7  ;;  %v443_v14 = vmul.f32 %v2010_v12, %v435_v8  ;;  %s2146_s21 = scalar_lea.vmem %s2385_s2, %s1478_s18  ;;  %s1479_s8 = sshll.u32 %s1949_s28, 8 }
  0x1a   : > { %1554 = vmatprep.mubr.msk.f32.mxu0 %vm334_vm0, %v311_v9  ;;  %v1673_v11 = vpack.c.bf16 %v312_v10, %v311_v9  ;;  %v471_v2 = vld [vmem:[%s2146_s21 + $0x8] sm:$0xff]  ;;  %v470_v3 = vld [vmem:[%s2146_s21] sm:$0xff]  ;;  %v473_v8 = vld [vmem:[%s2146_s21 + $0x18] sm:$0xff]  ;;  %s2336_s15 = scalar_lea.hbm %s2390_s7, %s1479_s8  ;;  %s2342_s28 = scalar_lea.sflag [#allocation3], %s295_s20 }
  0x1b   : > { %v1739_v15 = vpack.i.bf16 %v443_v14, %v442_v13  ;;  %1555 = vmatmul.mubr.msk.f32.vlgmr.msra.gmra.mrb[0].mxu0 %vm334_vm0, %v312_v10  ;;  %v472_v10 = vld [vmem:[%s2146_s21 + $0x10] sm:$0xff]  ;;  %s1822_s18 = sshll.u32 %s1885_s17, 4  ;;  %s1823_s18 = int_to_ptr.vmem [resolvable:$false] %s1822_s18 }
  0x1c   : > { %1674 = vmatprep.subr.bf16.mxu0 %v1673_v11  ;;  %s1824_s19 = scalar_lea.vmem %s1823_s18, 512 }
  0x1d   : > { %1740 = vrot.lane.b32.xlu0 %v1739_v15, %s1882_s29  ;;  %1676 = vmatpush3.bf16.msra.mxu0 %v1673_v11  ;;  %s1883_s29 = smov 96  }
  0x81   : > { %v430_v16 = vpop.permute.xlu0 %429 }
  0x8f   : > { %v1741_v18 = vpop.permute.xlu0 %1740 }
  0xee   : > { %v1556_v19 = vpop.f32.mrb[0].mxu0 }
  0xef   : > { %v2018_v20 = vadd.f32 %v1556_v19, %v1415_v17  ;;  %v433_v21 = vadd.f32 %v1556_v19, %v430_v16  ;;  %v407_v22 = vpop.f32.mrb[1].mxu0 }
  0xf0   : > { %v421_v24 = vadd.f32 %v1415_v17, %v407_v22  ;;  %v432_v25 = vadd.f32 %v430_v16, %v407_v22  ;;  %v475_v17 = vld [vmem:[%s2146_s21 + $0x28] sm:$0xff] }
  0xf1   : > { %v455_v38 = vmul.f32 %v2018_v20, %v2032_v36  ;;  %v457_v42 = vmul.f32 %v2018_v20, %v2045_v40  ;;  %v459_v46 = vmul.f32 %v2018_v20, %v2060_v44  ;;  %v461_v50 = vmul.f32 %v2018_v20, %v2075_v48 }
  0xf2   : > { %v1744_v26 = vpack.i.bf16 %v433_v21, %v432_v25  ;;  %v454_v27 = vmul.f32 %v421_v24, %v2023_v23  ;;  %v456_v39 = vmul.f32 %v421_v24, %v2037_v37  ;;  %v458_v43 = vmul.f32 %v421_v24, %v2051_v41  ;;  %v477_v25 = vld [vmem:[%s2146_s21 + $0x38] sm:$0xff] }
  0xf3   : > { %v460_v47 = vmul.f32 %v421_v24, %v2066_v45  ;;  %v462_v51 = vmul.f32 %v421_v24, %v2081_v49  ;;  %v463_v54 = vmul.f32 %v2018_v20, %v2090_v52  ;;  %v464_v55 = vmul.f32 %v421_v24, %v2096_v53 }
  0xf4   : > { %1745 = vrot.lane.b32.xlu1 %v1744_v26, %s1883_s29  ;;  %1565 = vmatprep.mubr.msk.f32.mxu1 %vm334_vm0, %v454_v27  ;;  %v465_v58 = vmul.f32 %v2018_v20, %v2105_v56  ;;  %v466_v59 = vmul.f32 %v421_v24, %v2111_v57  ;;  %v467_v62 = vmul.f32 %v2018_v20, %v2120_v60  ;;  %v476_v26 = vld [vmem:[%s2146_s21 + $0x30] sm:$0xff] }
  0xf5   : > { %v468_v63 = vmul.f32 %v421_v24, %v2126_v61  ;;  %v469_v1 = vmul.f32 %v2018_v20, %v2135_v0 }
  0xf8   : > { %1750 = vrot.lane.b32.xlu1 %v1741_v18, %s1883_s29  ;;  %v474_v18 = vld [vmem:[%s2146_s21 + $0x20] sm:$0xff] }
 0x166   : > { %v1746_v28 = vpop.permute.xlu1 %1745 }
 0x167   : > { %v1748_v29 = vunpack.i.h.bf16 %v1746_v28  ;;  %v1747_v30 = vunpack.i.l.bf16 %v1746_v28 }
 0x169   : > { %v1661_v31 = vpack.c.bf16 %v1748_v29, %v1747_v30 }
 0x16a   : > { %v1751_v32 = vpop.permute.xlu1 %1750 }
 0x16b   : > { %1663 = vmatprep.subr.msk.bf16.mxu1 %vm1662_vm1, %v1661_v31  ;;  %v1753_v33 = vunpack.i.h.bf16 %v1751_v32  ;;  %v1752_v34 = vunpack.i.l.bf16 %v1751_v32 }
 0x16c   : > { %1666 = vmatpush3.bf16.xpose.msk.msra.mxu1 %vm1662_vm1, %v1661_v31 }
 0x16d   : > { %v1667_v35 = vpack.c.bf16 %v1753_v33, %v1752_v34  ;;  %v479_v33 = vld [vmem:[%s2146_s21 + $0x48] sm:$0xff]  ;;  %v478_v34 = vld [vmem:[%s2146_s21 + $0x40] sm:$0xff] }
 0x16f   : > { %1669 = vmatprep.subr.msk.bf16.mxu1 %vm1662_vm1, %v1667_v35 }
 0x174   : > { %1672 = vmatpush3.bf16.xpose.msk.msra.mxu1 %vm1662_vm1, %v1667_v35 }
 0x175   : > { %1691 = vmatprep.subr.bf16.mxu1 %v1673_v11 }
 0x17b   : > { %1566 = vmatmul.mubr.msk.f32.vlgmr.msra.gmra.mrb[0].mxu1 %vm334_vm0, %v455_v38 }
 0x17c   : > { %1568 = vmatprep.mubr.msk.f32.mxu1 %vm334_vm0, %v456_v39  ;;  %1693 = vmatpush3.bf16.msra.mxu1 %v1673_v11 }
 0x17f   : > { %1569 = vmatmul.mubr.msk.f32.gmra.mrb[2].mxu1 %vm334_vm0, %v457_v42 }
 0x180   : > { %1571 = vmatprep.mubr.msk.f32.mxu1 %vm334_vm0, %v458_v43 }
 0x183   : > { %1572 = vmatmul.mubr.msk.f32.gmra.mrb[4].mxu1 %vm334_vm0, %v459_v46 }
 0x184   : > { %1574 = vmatprep.mubr.msk.f32.mxu1 %vm334_vm0, %v460_v47  ;;  %v481_v47 = vld [vmem:[%s2146_s21 + $0x58] sm:$0xff] }
 0x187   : > { %1575 = vmatmul.mubr.msk.f32.gmra.mrb[6].mxu1 %vm334_vm0, %v461_v50  ;;  %v480_v50 = vld [vmem:[%s2146_s21 + $0x50] sm:$0xff] }
 0x188   : > { %1577 = vmatprep.mubr.msk.f32.mxu1 %vm334_vm0, %v462_v51 }
 0x18b   : > { %1578 = vmatmul.mubr.msk.f32.gmra.mrb[8].mxu1 %vm334_vm0, %v463_v54 }
 0x18c   : > { %1580 = vmatprep.mubr.msk.f32.mxu1 %vm334_vm0, %v464_v55 }
 0x18f   : > { %1581 = vmatmul.mubr.msk.f32.gmra.mrb[10].mxu1 %vm334_vm0, %v465_v58 }
 0x190   : > { %1583 = vmatprep.mubr.msk.f32.mxu1 %vm334_vm0, %v466_v59 }
 0x193   : > { %1584 = vmatmul.mubr.msk.f32.gmra.mrb[12].mxu1 %vm334_vm0, %v467_v62 }
 0x194   : > { %1586 = vmatprep.mubr.msk.f32.mxu1 %vm334_vm0, %v468_v63  ;;  %v483_v63 = vld [vmem:[%s2146_s21 + $0x68] sm:$0xff] }
 0x197   : > { %1587 = vmatmul.mubr.msk.f32.gmra.mrb[14].mxu1 %vm334_vm0, %v469_v1  ;;  %v482_v1 = vld [vmem:[%s2146_s21 + $0x60] sm:$0xff] }
 0x24e   : > { %v1567_v4 = vpop.f32.mrb[0].mxu1 }
 0x24f   : > { %v2150_v5 = vadd.f32 %v1567_v4, %v471_v2  ;;  %v618_v6 = vpop.f32.mrb[1].mxu1 }
 0x250   : > { %v2152_v7 = vadd.f32 %v618_v6, %v470_v3 }
 0x251   : > { %v701_v9 = vsel %vm697_vm2, %v2150_v5, -inf }
 0x252   : > { %702 = vmax.xlane.f32.xlu1 %v701_v9  ;;  %v1570_v11 = vpop.f32.mrb[2].mxu1  ;;  %v698_v13 = vsel %vm697_vm2, %v2152_v7, -inf }
 0x253   : > { %v2160_v14 = vadd.f32 %v1570_v11, %v473_v8  ;;  %v628_v15 = vpop.f32.mrb[3].mxu1  ;;  %699 = vmax.xlane.f32.xlu0 %v698_v13  ;;  %v484_v11 = vld [vmem:[%s2146_s21 + $0x70] sm:$0xff] }
 0x254   : > { %v2162_v16 = vadd.f32 %v628_v15, %v472_v10  ;;  %v485_v10 = vld [vmem:[%s2146_s21 + $0x78] sm:$0xff]  ;;  %s1408_s21 = sshll.u32 %s295_s20, 4 }
 0x255   : > { %v707_v29 = vsel %vm697_vm2, %v2160_v14, -inf  ;;  %s297_s9 = scalar_lea.vmem [#allocation2], %s1408_s21 }
 0x256   : > { %v1573_v19 = vpop.f32.mrb[4].mxu1  ;;  %v704_v20 = vsel %vm697_vm2, %v2162_v16, -inf  ;;  %s1321_s13 = sshll.u32 %s297_s9, 4  ;;  %s2338_s13 = int_to_ptr.vmem [resolvable:$true] %s1321_s13 }
 0x257   : > { %v2168_v21 = vadd.f32 %v1573_v19, %v475_v17  ;;  %v638_v22 = vpop.f32.mrb[5].mxu1  ;;  %705 = vmax.xlane.f32.xlu0 %v704_v20  ;;  %s1818_s16 = scalar_lea.vmem %s2338_s13, 256  ;;  %p1825_p0 = scmp.lt.s32.totalorder %s2338_s13, %s1823_s18 }
 0x258   : > { %v2170_v24 = vadd.f32 %v638_v22, %v474_v18  ;;  %v444_v22 = vld [vmem:[%s2389_s6 + $0xa] sm:$0xff]  ;;  %p1819_p11 = scmp.ne.s32.totalorder %s2338_s13, %s1818_s16  ;;  %p1826_p1 = scmp.lt.s32.totalorder %s1824_s19, %s1818_s16 }
 0x259   : > { %v713_v39 = vsel %vm697_vm2, %v2168_v21, -inf }
 0x25a   : > { %v1576_v27 = vpop.f32.mrb[6].mxu1  ;;  %v710_v28 = vsel %vm697_vm2, %v2170_v24, -inf  ;;  %p1820_p12 = pnand %p1819_p11, %p1966_p5  ;;  %p1827_p2 = por %p1826_p1, %p1825_p0 }
 0x25b   : > { %v2178_v30 = vadd.f32 %v1576_v27, %v477_v25  ;;  %v648_v31 = vpop.f32.mrb[7].mxu1  ;;  %711 = vmax.xlane.f32.xlu1 %v710_v28  ;;  %708 = vmax.xlane.f32.xlu0 %v707_v29  ;;  %v445_v25 = vld [vmem:[%s2389_s6 + $0x12] sm:$0x3] }
 0x25c   : > { %v2180_v32 = vadd.f32 %v648_v31, %v476_v26  ;;  %v446_v26 = vmul.f32 %v2010_v12, %v444_v22  ;;  %v447_v27 = vmul.f32 %v2010_v12, %v445_v25  ;;  %p1821_p13 = pneg %p1820_p12 }
 0x25d   : > { %v719_v55 = vsel %vm697_vm2, %v2178_v30, -inf }
 0x25e   : > { %v1579_v35 = vpop.f32.mrb[8].mxu1  ;;  %v716_v38 = vsel %vm697_vm2, %v2180_v32, -inf  ;;  %v1677_v31 = vpack.c.bf16 %v447_v27, %v446_v26  ;;  %p1828_p3 = pnand %p1827_p2, %p1821_p13 }
 0x25f   : > { %v2188_v42 = vadd.f32 %v1579_v35, %v479_v33  ;;  %v658_v43 = vpop.f32.mrb[9].mxu1  ;;  %717 = vmax.xlane.f32.xlu1 %v716_v38  ;;  %714 = vmax.xlane.f32.xlu0 %v713_v39 }
 0x260   : > { %v2190_v46 = vadd.f32 %v658_v43, %v478_v34  ;;  %1679 = vmatprep.subr.msk.bf16.mxu0 %vm1678_vm5, %v1677_v31  ;;  %1692 = vmatprep.subr.msk.bf16.mxu1 %vm1678_vm5, %v1677_v31 }
 0x261   : > { %v725_v4 = vsel %vm697_vm2, %v2188_v42, -inf  ;;  %1682 = vmatpush3.bf16.msk.msra.mxu0 %vm1678_vm5, %v1677_v31  ;;  %1694 = vmatpush3.bf16.msk.msra.mxu1 %vm1678_vm5, %v1677_v31 }
 0x262   : > { %v1582_v51 = vpop.f32.mrb[10].mxu1  ;;  %v722_v54 = vsel %vm697_vm2, %v2190_v46, -inf }
 0x263   : > { %v2198_v58 = vadd.f32 %v1582_v51, %v481_v47  ;;  %v668_v59 = vpop.f32.mrb[11].mxu1  ;;  %723 = vmax.xlane.f32.xlu1 %v722_v54  ;;  %720 = vmax.xlane.f32.xlu0 %v719_v55 }
 0x264   : > { %v2200_v62 = vadd.f32 %v668_v59, %v480_v50 }
 0x265   : > { %v731_v17 = vsel %vm697_vm2, %v2198_v58, -inf }
 0x266   : > { %v1585_v2 = vpop.f32.mrb[12].mxu1  ;;  %v728_v3 = vsel %vm697_vm2, %v2200_v62, -inf }
 0x267   : > { %v2208_v6 = vadd.f32 %v1585_v2, %v483_v63  ;;  %v678_v8 = vpop.f32.mrb[13].mxu1  ;;  %729 = vmax.xlane.f32.xlu1 %v728_v3  ;;  %726 = vmax.xlane.f32.xlu0 %v725_v4 }
 0x268   : > { %v2210_v9 = vadd.f32 %v678_v8, %v482_v1 }
 0x269   : > { %v737_v29 = vsel %vm697_vm2, %v2208_v6, -inf }
 0x26a   : > { %v1588_v13 = vpop.f32.mrb[14].mxu1  ;;  %v734_v15 = vsel %vm697_vm2, %v2210_v9, -inf }
 0x26b   : > { %v2218_v18 = vadd.f32 %v1588_v13, %v485_v10  ;;  %v688_v19 = vpop.f32.mrb[15].mxu1  ;;  %735 = vmax.xlane.f32.xlu1 %v734_v15  ;;  %732 = vmax.xlane.f32.xlu0 %v731_v17 }
 0x26c   : > { %v2220_v20 = vadd.f32 %v688_v19, %v484_v11 }
 0x26d   : > { %v743_v33 = vsel %vm697_vm2, %v2218_v18, -inf }
 0x26e   : > { %v740_v28 = vsel %vm697_vm2, %v2220_v20, -inf }
 0x26f   : > { %741 = vmax.xlane.f32.xlu1 %v740_v28  ;;  %738 = vmax.xlane.f32.xlu0 %v737_v29 }
 0x273   : > { %744 = vmax.xlane.f32.xlu0 %v743_v33 }
 0x2df   : > { %v703_v12 = vpop.xlane.xlu1 %702 }
 0x2e0   : > { %v747_v34 = vsub.f32 %v2150_v5, %v703_v12  ;;  %v700_v35 = vpop.xlane.xlu0 %699 }
 0x2e1   : > { %v746_v38 = vsub.f32 %v2152_v7, %v700_v35 }
 0x2e2   : > { %v764_v39 = vmul.f32 1.442695, %v747_v34 }
 0x2e3   : > { %v762_v43 = vmul.f32 1.442695, %v746_v38 }
 0x2e4   : > { %1754 = vpow2.f32 %v764_v39  ;;  %v706_v47 = vpop.xlane.xlu0 %705 }
 0x2e5   : > { %1756 = vpow2.f32 %v762_v43  ;;  %v748_v50 = vsub.f32 %v2162_v16, %v706_v47 }
 0x2e7   : > { %v766_v51 = vmul.f32 1.442695, %v748_v50 }
 0x2e8   : > { %v712_v54 = vpop.xlane.xlu1 %711  ;;  %v709_v55 = vpop.xlane.xlu0 %708 }
 0x2e9   : > { %1758 = vpow2.f32 %v766_v51  ;;  %v750_v59 = vsub.f32 %v2170_v24, %v712_v54  ;;  %v749_v63 = vsub.f32 %v2160_v14, %v709_v55 }
 0x2eb   : > { %v770_v1 = vmul.f32 1.442695, %v750_v59  ;;  %v768_v5 = vmul.f32 1.442695, %v749_v63 }
 0x2ec   : > { %v718_v2 = vpop.xlane.xlu1 %717  ;;  %v715_v3 = vpop.xlane.xlu0 %714 }
 0x2ed   : > { %1760 = vpow2.f32 %v770_v1  ;;  %v752_v7 = vsub.f32 %v2180_v32, %v718_v2  ;;  %v751_v4 = vsub.f32 %v2168_v21, %v715_v3 }
 0x2ee   : > { %v1755_v8 = vpop.eup %1754  ;;  %1762 = vpow2.f32 %v768_v5 }
 0x2ef   : > { %v1757_v16 = vpop.eup %1756  ;;  %v774_v10 = vmul.f32 1.442695, %v752_v7  ;;  %v772_v11 = vmul.f32 1.442695, %v751_v4  ;;  %v797_v13 = vsel %vm697_vm2, %v1755_v8, 0.0 }
 0x2f0   : > { %v724_v15 = vpop.xlane.xlu1 %723  ;;  %798 = vadd.xlane.f32.xlu0 %v797_v13  ;;  %1597 = vmatprep.mubr.msk.f32.mxu0 %vm697_vm2, %v1757_v16  ;;  %v721_v14 = vpop.xlane.xlu0 %720  ;;  %v794_v24 = vsel %vm697_vm2, %v1757_v16, 0.0 }
 0x2f1   : > { %1764 = vpow2.f32 %v774_v10  ;;  %v754_v17 = vsub.f32 %v2190_v46, %v724_v15  ;;  %v753_v32 = vsub.f32 %v2178_v30, %v721_v14  ;;  %1598 = vmatmul.mubr.msk.f32.vlgmr.msra.gmra.mrb[2].mxu0 %vm697_vm2, %v1755_v8  ;;  %795 = vadd.xlane.f32.xlu1 %v794_v24 }
 0x2f2   : > { %1766 = vpow2.f32 %v772_v11 }
 0x2f3   : > { %v1759_v21 = vpop.eup %1758  ;;  %v778_v19 = vmul.f32 1.442695, %v754_v17  ;;  %v776_v22 = vmul.f32 1.442695, %v753_v32 }
 0x2f4   : > { %v730_v25 = vpop.xlane.xlu1 %729  ;;  %1600 = vmatprep.mubr.msk.f32.mxu0 %vm697_vm2, %v1759_v21  ;;  %v727_v26 = vpop.xlane.xlu0 %726  ;;  %v800_v27 = vsel %vm697_vm2, %v1759_v21, 0.0 }
 0x2f5   : > { %1768 = vpow2.f32 %v778_v19  ;;  %v756_v28 = vsub.f32 %v2200_v62, %v730_v25  ;;  %v755_v46 = vsub.f32 %v2188_v42, %v727_v26  ;;  %801 = vadd.xlane.f32.xlu1 %v800_v27  ;;  %v1071_v25 = vld [vmem:[%s2388_s5] sm:$0xff]  ;;  %v1072_v26 = vld [vmem:[%s2388_s5 + $0x8] sm:$0xff]  ;;  %v1073_v27 = vld [vmem:[%s2388_s5 + $0x10] sm:$0xff] }
 0x2f6   : > { %1770 = vpow2.f32 %v776_v22 }
 0x2f7   : > { %v1761_v30 = vpop.eup %1760  ;;  %v782_v29 = vmul.f32 1.442695, %v756_v28  ;;  %v780_v31 = vmul.f32 1.442695, %v755_v46  ;;  %v1683_v28 = vpack.c.bf16 %v1072_v26, %v1071_v25  ;;  %v1074_v46 = vld [vmem:[%s2388_s5 + $0x18] sm:$0xff] }
 0x2f8   : > { %v1763_v33 = vpop.eup %1762  ;;  %v736_v12 = vpop.xlane.xlu1 %735  ;;  %v806_v35 = vsel %vm697_vm2, %v1761_v30, 0.0 }
 0x2f9   : > { %v733_v34 = vpop.xlane.xlu0 %732  ;;  %1772 = vpow2.f32 %v782_v29  ;;  %v758_v38 = vsub.f32 %v2210_v9, %v736_v12  ;;  %1601 = vmatmul.mubr.msk.f32.gmra.mrb[4].mxu0 %vm697_vm2, %v1763_v33  ;;  %807 = vadd.xlane.f32.xlu1 %v806_v35  ;;  %v803_v42 = vsel %vm697_vm2, %v1763_v33, 0.0 }
 0x2fa   : > { %v757_v39 = vsub.f32 %v2198_v58, %v733_v34  ;;  %1774 = vpow2.f32 %v780_v31  ;;  %1603 = vmatprep.mubr.msk.f32.mxu0 %vm697_vm2, %v1761_v30  ;;  %804 = vadd.xlane.f32.xlu0 %v803_v42  ;;  %v1687_v30 = vpack.c.bf16 %v1074_v46, %v1073_v27 }
 0x2fb   : > { %v1765_v62 = vpop.eup %1764  ;;  %v786_v43 = vmul.f32 1.442695, %v758_v38  ;;  %1684 = vmatprep.subr.bf16.mxu0 %v1683_v28 }
 0x2fc   : > { %v784_v47 = vmul.f32 1.442695, %v757_v39  ;;  %v1767_v50 = vpop.eup %1766  ;;  %v742_v51 = vpop.xlane.xlu1 %741  ;;  %v812_v55 = vsel %vm697_vm2, %v1765_v62, 0.0  ;;  %1686 = vmatpush3.bf16.msra.mxu0 %v1683_v28 }
 0x2fd   : > { %v739_v54 = vpop.xlane.xlu0 %738  ;;  %1776 = vpow2.f32 %v786_v43  ;;  %v760_v9 = vsub.f32 %v2220_v20, %v742_v51  ;;  %1604 = vmatmul.mubr.msk.f32.gmra.mrb[6].mxu0 %vm697_vm2, %v1767_v50  ;;  %813 = vadd.xlane.f32.xlu1 %v812_v55  ;;  %v809_v59 = vsel %vm697_vm2, %v1767_v50, 0.0 }
 0x2fe   : > { %v759_v58 = vsub.f32 %v2208_v6, %v739_v54  ;;  %1778 = vpow2.f32 %v784_v47  ;;  %1606 = vmatprep.mubr.msk.f32.mxu0 %vm697_vm2, %v1765_v62  ;;  %810 = vadd.xlane.f32.xlu0 %v809_v59 }
 0x2ff   : > { %v1769_v63 = vpop.eup %1768  ;;  %v790_v1 = vmul.f32 1.442695, %v760_v9  ;;  %1688 = vmatprep.subr.bf16.mxu0 %v1687_v30 }
 0x300   : > { %v788_v5 = vmul.f32 1.442695, %v759_v58  ;;  %v1771_v2 = vpop.eup %1770  ;;  %1609 = vmatprep.mubr.msk.f32.mxu1 %vm697_vm2, %v1769_v63  ;;  %v818_v20 = vsel %vm697_vm2, %v1769_v63, 0.0  ;;  %1690 = vmatpush3.bf16.msra.mxu0 %v1687_v30 }
 0x301   : > { %v745_v3 = vpop.xlane.xlu0 %744  ;;  %1780 = vpow2.f32 %v790_v1  ;;  %1607 = vmatmul.mubr.msk.f32.gmra.mrb[8].mxu0 %vm697_vm2, %v1771_v2  ;;  %819 = vadd.xlane.f32.xlu1 %v818_v20  ;;  %v815_v7 = vsel %vm697_vm2, %v1771_v2, 0.0 }
 0x302   : > { %v761_v6 = vsub.f32 %v2218_v18, %v745_v3  ;;  %1782 = vpow2.f32 %v788_v5  ;;  %816 = vadd.xlane.f32.xlu0 %v815_v7 }
 0x303   : > { %v1773_v4 = vpop.eup %1772 }
 0x304   : > { %v792_v8 = vmul.f32 1.442695, %v761_v6  ;;  %v1775_v16 = vpop.eup %1774  ;;  %v824_v10 = vsel %vm697_vm2, %v1773_v4, 0.0 }
 0x305   : > { %1610 = vmatmul.mubr.msk.f32.vlgmr.msra.gmra.mrb[16].mxu1 %vm697_vm2, %v1775_v16  ;;  %825 = vadd.xlane.f32.xlu1 %v824_v10  ;;  %v821_v11 = vsel %vm697_vm2, %v1775_v16, 0.0 }
 0x306   : > { %1784 = vpow2.f32 %v792_v8  ;;  %1612 = vmatprep.mubr.msk.f32.mxu1 %vm697_vm2, %v1773_v4  ;;  %822 = vadd.xlane.f32.xlu0 %v821_v11 }
 0x307   : > { %v1777_v18 = vpop.eup %1776 }
 0x308   : > { %v1779_v13 = vpop.eup %1778  ;;  %v830_v15 = vsel %vm697_vm2, %v1777_v18, 0.0 }
 0x309   : > { %1613 = vmatmul.mubr.msk.f32.gmra.mrb[18].mxu1 %vm697_vm2, %v1779_v13  ;;  %831 = vadd.xlane.f32.xlu1 %v830_v15  ;;  %v827_v14 = vsel %vm697_vm2, %v1779_v13, 0.0 }
 0x30a   : > { %1615 = vmatprep.mubr.msk.f32.mxu1 %vm697_vm2, %v1777_v18  ;;  %828 = vadd.xlane.f32.xlu0 %v827_v14 }
 0x30b   : > { %v1781_v24 = vpop.eup %1780 }
 0x30c   : > { %v1783_v17 = vpop.eup %1782  ;;  %v836_v32 = vsel %vm697_vm2, %v1781_v24, 0.0 }
 0x30d   : > { %1616 = vmatmul.mubr.msk.f32.gmra.mrb[20].mxu1 %vm697_vm2, %v1783_v17  ;;  %837 = vadd.xlane.f32.xlu1 %v836_v32  ;;  %v833_v21 = vsel %vm697_vm2, %v1783_v17, 0.0 }
 0x30e   : > { %1618 = vmatprep.mubr.msk.f32.mxu1 %vm697_vm2, %v1781_v24  ;;  %834 = vadd.xlane.f32.xlu0 %v833_v21 }
 0x310   : > { %v1785_v19 = vpop.eup %1784 }
 0x311   : > { %v839_v22 = vsel %vm697_vm2, %v1785_v19, 0.0  ;;  %1619 = vmatmul.mubr.msk.f32.gmra.mrb[22].mxu1 %vm697_vm2, %v1785_v19 }
 0x312   : > { %840 = vadd.xlane.f32.xlu0 %v839_v22 }
 0x37d   : > { %v799_v31 = vpop.xlane.xlu0 %798 }
 0x37e   : > { %v796_v29 = vpop.xlane.xlu1 %795 }
 0x37f   : > { %1786 = vrcp.f32 %v796_v29 }
 0x380   : > { %1788 = vrcp.f32 %v799_v31 }
 0x382   : > { %v802_v33 = vpop.xlane.xlu1 %801 }
 0x383   : > { %1790 = vrcp.f32 %v802_v33 }
 0x386   : > { %v808_v34 = vpop.xlane.xlu1 %807 }
 0x387   : > { %v805_v12 = vpop.xlane.xlu0 %804 }
 0x388   : > { %1792 = vrcp.f32 %v805_v12 }
 0x389   : > { %v1787_v62 = vpop.eup %1786  ;;  %1794 = vrcp.f32 %v808_v34 }
 0x38a   : > { %v814_v38 = vpop.xlane.xlu1 %813  ;;  %v1789_v47 = vpop.eup %1788 }
 0x38b   : > { %v811_v35 = vpop.xlane.xlu0 %810 }
 0x38c   : > { %1796 = vrcp.f32 %v811_v35 }
 0x38d   : > { %1798 = vrcp.f32 %v814_v38  ;;  %v1791_v59 = vpop.eup %1790 }
 0x38e   : > { %v820_v50 = vpop.xlane.xlu1 %819 }
 0x38f   : > { %v817_v39 = vpop.xlane.xlu0 %816 }
 0x390   : > { %1800 = vrcp.f32 %v817_v39 }
 0x391   : > { %1802 = vrcp.f32 %v820_v50 }
 0x392   : > { %v826_v9 = vpop.xlane.xlu1 %825  ;;  %v1793_v5 = vpop.eup %1792 }
 0x393   : > { %v823_v54 = vpop.xlane.xlu0 %822  ;;  %v1795_v6 = vpop.eup %1794 }
 0x394   : > { %1804 = vrcp.f32 %v823_v54 }
 0x395   : > { %1806 = vrcp.f32 %v826_v9 }
 0x396   : > { %v1797_v4 = vpop.eup %1796  ;;  %v832_v8 = vpop.xlane.xlu1 %831 }
 0x397   : > { %v829_v63 = vpop.xlane.xlu0 %828  ;;  %v1799_v13 = vpop.eup %1798 }
 0x398   : > { %1808 = vrcp.f32 %v829_v63 }
 0x399   : > { %1810 = vrcp.f32 %v832_v8 }
 0x39a   : > { %v1801_v14 = vpop.eup %1800  ;;  %v838_v32 = vpop.xlane.xlu1 %837 }
 0x39b   : > { %v835_v10 = vpop.xlane.xlu0 %834  ;;  %v1803_v19 = vpop.eup %1802 }
 0x39c   : > { %1812 = vrcp.f32 %v835_v10 }
 0x39d   : > { %1814 = vrcp.f32 %v838_v32 }
 0x39e   : > { %v1805_v26 = vpop.eup %1804 }
 0x39f   : > { %v841_v22 = vpop.xlane.xlu0 %840  ;;  %v1807_v30 = vpop.eup %1806 }
 0x3a0   : > { %1816 = vrcp.f32 %v841_v22 }
 0x3a2   : > { %v1809_v31 = vpop.eup %1808 }
 0x3a3   : > { %v1811_v35 = vpop.eup %1810 }
 0x3a6   : > { %v1813_v39 = vpop.eup %1812 }
 0x3c4   : > { %v1599_v42 = vpop.f32.mrb[2].mxu0 }
 0x3c5   : > { %v976_v43 = vpop.f32.mrb[3].mxu0  ;;  %v1056_v55 = vmul.f32 %v1789_v47, %v1599_v42  ;;  %v1815_v47 = vpop.eup %1814 }
 0x3c6   : > { %v1055_v51 = vmul.f32 %v1787_v62, %v976_v43 }
 0x3c8   : > { %1629 = vmatprep.mubr.msk.f32.mxu0 %vm334_vm0, %v1055_v51  ;;  %v1817_v51 = vpop.eup %1816 }
 0x3c9   : > { %1630 = vmatmul.mubr.msk.f32.vlgmr.msra.gmra.mrb[10].mxu0 %vm334_vm0, %v1056_v55 }
 0x3cc   : > { %v1602_v58 = vpop.f32.mrb[4].mxu0 }
 0x3cd   : > { %v986_v1 = vpop.f32.mrb[5].mxu0  ;;  %v1058_v3 = vmul.f32 %v1793_v5, %v1602_v58 }
 0x3ce   : > { %v1057_v2 = vmul.f32 %v1791_v59, %v986_v1 }
 0x3d0   : > { %v1605_v20 = vpop.f32.mrb[6].mxu0  ;;  %1632 = vmatprep.mubr.msk.f32.mxu0 %vm334_vm0, %v1057_v2 }
 0x3d1   : > { %v996_v7 = vpop.f32.mrb[7].mxu0  ;;  %1633 = vmatmul.mubr.msk.f32.gmra.mrb[12].mxu0 %vm334_vm0, %v1058_v3  ;;  %v1060_v11 = vmul.f32 %v1797_v4, %v1605_v20 }
 0x3d2   : > { %v1059_v16 = vmul.f32 %v1795_v6, %v996_v7 }
 0x3d4   : > { %v1608_v18 = vpop.f32.mrb[8].mxu0  ;;  %1635 = vmatprep.mubr.msk.f32.mxu0 %vm334_vm0, %v1059_v16 }
 0x3d5   : > { %v1006_v15 = vpop.f32.mrb[9].mxu0  ;;  %1636 = vmatmul.mubr.msk.f32.gmra.mrb[14].mxu0 %vm334_vm0, %v1060_v11  ;;  %v1062_v17 = vmul.f32 %v1801_v14, %v1608_v18 }
 0x3d6   : > { %v1061_v24 = vmul.f32 %v1799_v13, %v1006_v15 }
 0x3d8   : > { %v1611_v21 = vpop.f32.mrb[16].mxu1  ;;  %1638 = vmatprep.mubr.msk.f32.mxu0 %vm334_vm0, %v1061_v24 }
 0x3d9   : > { %v1016_v25 = vpop.f32.mrb[17].mxu1  ;;  %1639 = vmatmul.mubr.msk.f32.gmra.mrb[16].mxu0 %vm334_vm0, %v1062_v17  ;;  %v1064_v28 = vmul.f32 %v1805_v26, %v1611_v21 }
 0x3da   : > { %v1063_v27 = vmul.f32 %v1803_v19, %v1016_v25 }
 0x3dc   : > { %v1614_v46 = vpop.f32.mrb[18].mxu1  ;;  %1641 = vmatprep.mubr.msk.f32.mxu0 %vm334_vm0, %v1063_v27 }
 0x3dd   : > { %v1026_v29 = vpop.f32.mrb[19].mxu1  ;;  %1642 = vmatmul.mubr.msk.f32.gmra.mrb[18].mxu0 %vm334_vm0, %v1064_v28  ;;  %v1066_v12 = vmul.f32 %v1809_v31, %v1614_v46 }
 0x3de   : > { %v1065_v33 = vmul.f32 %v1807_v30, %v1026_v29  ;;  %v1471_v29 = vld [vmem:[%s2389_s6 + $0x16] ss:$0 sm:$0xff] }
 0x3e0   : > { %v1617_v34 = vpop.f32.mrb[20].mxu1  ;;  %1644 = vmatprep.mubr.msk.f32.mxu0 %vm334_vm0, %v1065_v33 }
 0x3e1   : > { %v1036_v38 = vpop.f32.mrb[21].mxu1  ;;  %1645 = vmatmul.mubr.msk.f32.gmra.mrb[20].mxu0 %vm334_vm0, %v1066_v12  ;;  %v1068_v62 = vmul.f32 %v1813_v39, %v1617_v34 }
 0x3e2   : > { %v1067_v42 = vmul.f32 %v1811_v35, %v1036_v38 }
 0x3e4   : > { %v1620_v43 = vpop.f32.mrb[22].mxu1  ;;  %1647 = vmatprep.mubr.msk.f32.mxu0 %vm334_vm0, %v1067_v42 }
 0x3e5   : > { %v1046_v50 = vpop.f32.mrb[23].mxu1  ;;  %1648 = vmatmul.mubr.msk.f32.gmra.mrb[22].mxu0 %vm334_vm0, %v1068_v62  ;;  %v1070_v55 = vmul.f32 %v1817_v51, %v1620_v43 }
 0x3e6   : > { %v1069_v54 = vmul.f32 %v1815_v47, %v1046_v50 }
 0x3e8   : > { %1650 = vmatprep.mubr.msk.f32.mxu0 %vm334_vm0, %v1069_v54 }
 0x3e9   : > { %1651 = vmatmul.mubr.msk.f32.gmra.mrb[24].mxu0 %vm334_vm0, %v1070_v55 }
 0x49c   : > { %v1631_v9 = vpop.f32.mrb[10].mxu0 }
 0x49d   : > { %v1189_v58 = vpop.f32.mrb[11].mxu0  ;;  %v1269_v63 = vmul.f32 %v1631_v9, %v2032_v36 }
 0x49e   : > { %v1268_v2 = vmul.f32 %v1189_v58, %v2023_v23 }
 0x4a4   : > { %v1634_v59 = vpop.f32.mrb[12].mxu0 }
 0x4a5   : > { %v1271_v1 = vmul.f32 %v1634_v59, %v2045_v40  ;;  %v1199_v5 = vpop.f32.mrb[13].mxu0 }
 0x4a6   : > { %v1270_v3 = vmul.f32 %v1199_v5, %v2037_v37 }
 0x4a7   : > { %v1285_v20 = vadd.f32 %v1271_v1, %v1269_v63 }
 0x4a8   : > { %v1284_v6 = vadd.f32 %v1270_v3, %v1268_v2  ;;  %v1637_v7 = vpop.f32.mrb[14].mxu0 }
 0x4a9   : > { %v1273_v4 = vmul.f32 %v1637_v7, %v2060_v44  ;;  %v1209_v8 = vpop.f32.mrb[15].mxu0 }
 0x4aa   : > { %v1272_v16 = vmul.f32 %v1209_v8, %v2051_v41 }
 0x4ab   : > { %v1287_v10 = vadd.f32 %v1285_v20, %v1273_v4 }
 0x4ac   : > { %v1286_v11 = vadd.f32 %v1284_v6, %v1272_v16  ;;  %v1640_v18 = vpop.f32.mrb[16].mxu0 }
 0x4ad   : > { %v1275_v36 = vmul.f32 %v1640_v18, %v2075_v48  ;;  %v1219_v40 = vpop.f32.mrb[17].mxu0 }
 0x4ae   : > { %v1274_v13 = vmul.f32 %v1219_v40, %v2066_v45 }
 0x4af   : > { %v1289_v23 = vadd.f32 %v1287_v10, %v1275_v36 }
 0x4b0   : > { %v1288_v15 = vadd.f32 %v1286_v11, %v1274_v13  ;;  %v1643_v37 = vpop.f32.mrb[18].mxu0 }
 0x4b1   : > { %v1277_v14 = vmul.f32 %v1643_v37, %v2090_v52  ;;  %v1229_v24 = vpop.f32.mrb[19].mxu0 }
 0x4b2   : > { %v1276_v44 = vmul.f32 %v1229_v24, %v2081_v49 }
 0x4b3   : > { %v1291_v17 = vadd.f32 %v1289_v23, %v1277_v14 }
 0x4b4   : > { %v1290_v32 = vadd.f32 %v1288_v15, %v1276_v44  ;;  %v1646_v41 = vpop.f32.mrb[20].mxu0 }
 0x4b5   : > { %v1279_v21 = vmul.f32 %v1646_v41, %v2105_v56  ;;  %v1239_v19 = vpop.f32.mrb[21].mxu0 }
 0x4b6   : > { %v1278_v48 = vmul.f32 %v1239_v19, %v2096_v53 }
 0x4b7   : > { %v1293_v22 = vadd.f32 %v1291_v17, %v1279_v21 }
 0x4b8   : > { %v1292_v45 = vadd.f32 %v1290_v32, %v1278_v48  ;;  %v1649_v25 = vpop.f32.mrb[22].mxu0 }
 0x4b9   : > { %v1281_v26 = vmul.f32 %v1649_v25, %v2120_v60  ;;  %v1249_v52 = vpop.f32.mrb[23].mxu0 }
 0x4ba   : > { %v1280_v27 = vmul.f32 %v1249_v52, %v2111_v57 }
 0x4bb   : > { %v1295_v49 = vadd.f32 %v1293_v22, %v1281_v26 }
 0x4bc   : > { %v1294_v28 = vadd.f32 %v1292_v45, %v1280_v27  ;;  %v1652_v46 = vpop.f32.mrb[24].mxu0 }
 0x4bd   : > { %v1283_v30 = vmul.f32 %v1652_v46, %v2135_v0  ;;  %v1259_v56 = vpop.f32.mrb[25].mxu0 }
 0x4be   : > { %v1282_v53 = vmul.f32 %v1259_v56, %v2126_v61 }
 0x4bf   : > { %v1297_v60 = vadd.f32 %v1295_v49, %v1283_v30 }
 0x4c0   : > { %v1296_v31 = vadd.f32 %v1294_v28, %v1282_v53 }
 0x4c1   : > { %v1304_v33 = vadd.f32 %v1471_v29, %v1297_v60 }
 0x4c2   : > { %v1303_v57 = vadd.f32 %v1471_v29, %v1296_v31 }
 0x4c3   : > { %1306 = vst.msk [vmem:[%s297_s9 + $0x8] sm:$0xff] %vm334_vm0, %v1304_v33 }
 0x4c4   : > { %1305 = vst.msk [vmem:[%s297_s9] sm:$0xff] %vm334_vm0, %v1303_v57 }
 0x4c5   : > { %1831 = shalt.err (!%p1828_p3)
}
 0x4c6   : > { %s1832_s20 = scalar_lea.hbm %s2336_s15, 256  ;;  %s1836_s22 = scalar_lea.hbm %s2390_s7, 512 }
 0x4c7   : > { %p1833_p4 = scmp.ne.s32.totalorder %s2336_s15, %s1832_s20  ;;  %p1837_p9 = scmp.lt.u32.totalorder %s2336_s15, %s2390_s7 }
 0x4c8   : > { %p1838_p10 = scmp.lt.u32.totalorder %s1836_s22, %s1832_s20  ;;  %p1840_p12 = scmp.lt.u32.totalorder %s1832_s20, %s2336_s15 }
 0x4c9   : > { %p1834_p7 = pnand %p1833_p4, %p1966_p5 }
 0x4ca   : > { %p1839_p11 = por %p1838_p10, %p1837_p9 }
 0x4cb   : > { %p1835_p8 = pneg %p1834_p7 }
 0x4cc   : > { %p1841_p13 = por %p1840_p12, %p1839_p11 }
 0x4ce   : > { %p1842_p0 = pnand %p1841_p13, %p1835_p8 }
 0x4d0   : > { %1845 = shalt.err (!%p1842_p0)
}
 0x4d1   : > { %s1886_s29 = smov 128   ;;  %s1887_s14 = smov 8  }
 0x4d2   : > { %1695 = dma.vmem_to_hbm [thread:$0]  (%p1966_p5), %s2338_s13, 256, %s2336_s15, %s2342_s28, %s1886_s29, %s1886_s29, %s1887_s14  }
 0x4d3 PF: > { %p1701_p1 = scmp.ge.s32.totalorder %s1880_s27, 2  ;;  %s1336_s16 = sand.u32 1, %s1868_s24  }
 0x4d4   : > { %s1337_s17 = scalar_lea.sflag [#allocation3], %s1336_s16 }
 0x4d5   : > { %p1698_p2 = pnand %p1701_p1, %p1970_p6 }
 0x4d7   : > { %1863 = dma.done.wait (!%p1698_p2), %s1337_s17, 256  }
 0x4d8   : > { %1865 = vsyncadd (!%p1698_p2), %s1337_s17, 4294967040  ;;  %p17_p3 = scmp.ge.s32.totalorder %s1953_s30, 4   ;;  %s2393_s24 = smov %s1872_s25 }
 0x4d9   : > { %s2394_s25 = smov %s1876_s26  ;;  %s2395_s26 = smov %s1964_s10 }
 0x4da   : > { %s2396_s27 = smov %s1953_s30  ;;  %19 = sbr.rel (!%p17_p3) target bundleno = 3 (0x3), region = 89 }
 0x4e1   :  { %1342 = vsyncpa [#allocation3], 1 }
 0x4e2   :  { %1344 = vsyncpa [#allocation3 + $0x1], 1 }

</bundles_post_ra>
